<compile_context>
chip_gen: v6e
topology: v6e:2x2x1
jax: 0.10.0
libtpu: 0.0.40
codegen_flags: <defaults>
</compile_context>

<pallas_src>
import functools

import jax
import jax.numpy as jnp
from jax.experimental import pallas as pl
from jax.experimental.pallas import tpu as pltpu


def _round_up(x: int, m: int) -> int:
    return ((x + m - 1) // m) * m


def coral_kernel(xT_ref, w1_ref, b1_ref, w2_ref, b2th_ref,
                 probs_ref, logits_ref, cum_ref, *, n_cats: int):
    """One lane-tile (TN rows) of the CORAL forward pass, rows on lanes.

    xT_ref:     (D, TN)      transposed input features tile
    w1_ref:     (H, D)       shared-layer weight (torch (out, in) layout)
    b1_ref:     (H, 1)       shared-layer bias
    w2_ref:     (K-1, H)     rank-classifier weight (torch layout)
    b2th_ref:   (K-1, 1)     rank-classifier bias + ordinal thresholds (fused)
    probs_ref:  (K, TN)      output categorical probabilities (transposed)
    logits_ref: (K-1, TN)    output logits (pre-sigmoid, post-threshold)
    cum_ref:    (K-1, TN)    output rank-consistent cumulative probabilities
    """
    km1 = n_cats - 1

    x = xT_ref[...]                                               # (D, TN)

    # Shared layer: Linear + ReLU (Dropout is identity at rate 0 / eval).
    h = jnp.dot(w1_ref[...], x, preferred_element_type=jnp.float32)
    h = jnp.maximum(h + b1_ref[...], 0.0)                         # (H, TN)

    # Rank classifier with bias + ordinal thresholds fused into b2th.
    logits = (jnp.dot(w2_ref[...], h, preferred_element_type=jnp.float32)
              + b2th_ref[...])                                    # (K-1, TN)

    cum = jax.nn.sigmoid(logits)                                  # (K-1, TN)

    # Rank consistency: running minimum along the (tiny, static) K-1 sublane
    # axis.  K-1 is 4, so an unrolled sublane-row formulation is cheap and
    # keeps all TN lanes dense.
    rows = [cum[0:1, :]]
    for k in range(1, km1):
        rows.append(jnp.minimum(cum[k:k + 1, :], rows[-1]))
    cum_mono = jnp.concatenate(rows, axis=0)                      # (K-1, TN)

    # Cumulative -> categorical probabilities, assembled along sublanes.
    p0 = 1.0 - cum_mono[0:1, :]
    pk = cum_mono[:-1, :] - cum_mono[1:, :]
    pK = cum_mono[-1:, :]
    probs = jnp.concatenate([p0, pk, pK], axis=0)                 # (K, TN)
    probs = jnp.maximum(probs, 1e-7)

    # Normalize: approx reciprocal on the EUP slot + one Newton step so the
    # result stays within f32 (1e-5) accuracy of an exact divide.
    denom = jnp.sum(probs, axis=0, keepdims=True)                 # (1, TN)
    r = pl.reciprocal(denom, approx=True)
    r = r * (2.0 - denom * r)

    probs_ref[...] = probs * r
    logits_ref[...] = logits
    cum_ref[...] = cum_mono


def coral_forward(features, w1, b1, w2, b2, thresholds, *, n_cats: int,
                  lane_tile: int = 2048):
    """CORAL forward pass.

    features: (B, S, D) float32
    w1: (H, D)  torch (out, in) layout     b1: (H,)
    w2: (K-1, H) torch layout              b2: (K-1,)
    thresholds: (K-1,)
    Returns (probs (B,S,K), info dict with logits / cumulative_probs / thresholds).
    """
    B, S, D = features.shape
    H = w1.shape[0]
    km1 = n_cats - 1
    N = B * S

    # Lane tile: multiple of 128, large by default, never larger than needed.
    tn = min(_round_up(lane_tile, 128), _round_up(N, 128))
    n_pad = _round_up(N, tn)

    # Rows -> lanes: transpose features, zero-pad the lane (row) axis.
    xT = features.reshape(N, D).T                                  # (D, N)
    if n_pad != N:
        xT = jnp.pad(xT, ((0, 0), (0, n_pad - N)))

    b1_2d = b1.reshape(H, 1)
    b2th = (b2 + thresholds).reshape(km1, 1)    # fold bias + thresholds

    grid = (n_pad // tn,)
    kernel = functools.partial(coral_kernel, n_cats=n_cats)

    probs_t, logits_t, cum_t = pl.pallas_call(
        kernel,
        out_shape=(
            jax.ShapeDtypeStruct((n_cats, n_pad), jnp.float32),
            jax.ShapeDtypeStruct((km1, n_pad), jnp.float32),
            jax.ShapeDtypeStruct((km1, n_pad), jnp.float32),
        ),
        grid_spec=pltpu.PrefetchScalarGridSpec(
            num_scalar_prefetch=0,
            grid=grid,
            in_specs=[
                pl.BlockSpec((D, tn), lambda i: (0, i)),      # x^T (streamed)
                pl.BlockSpec((H, D), lambda i: (0, 0)),       # w1 (resident)
                pl.BlockSpec((H, 1), lambda i: (0, 0)),       # b1
                pl.BlockSpec((km1, H), lambda i: (0, 0)),     # w2
                pl.BlockSpec((km1, 1), lambda i: (0, 0)),     # b2 + thresholds
            ],
            out_specs=[
                pl.BlockSpec((n_cats, tn), lambda i: (0, i)),  # probs^T
                pl.BlockSpec((km1, tn), lambda i: (0, i)),     # logits^T
                pl.BlockSpec((km1, tn), lambda i: (0, i)),     # cum_probs^T
            ],
        ),
        compiler_params=pltpu.CompilerParams(
            dimension_semantics=("parallel",)),
    )(xT, w1, b1_2d, w2, b2th)

    # Strip padding, transpose back to rows-major, reshape to (B, S, ...).
    probs = probs_t[:, :N].T.reshape(B, S, n_cats)
    logits = logits_t[:, :N].T.reshape(B, S, km1)
    cum = cum_t[:, :N].T.reshape(B, S, km1)
    info = {"logits": logits, "cumulative_probs": cum, "thresholds": thresholds}
    return probs, info


def _reference_forward(features, w1, b1, w2, b2, thresholds, n_cats):
    """Pure-JAX reference (eval-mode PyTorch semantics), torch weight layout."""
    h = jnp.maximum(features @ w1.T + b1, 0.0)
    logits = h @ w2.T + b2 + thresholds
    cum = jax.nn.sigmoid(logits)
    cum = jax.lax.associative_scan(jnp.minimum, cum, axis=-1)
    p0 = 1.0 - cum[..., 0:1]
    pk = cum[..., :-1] - cum[..., 1:]
    pK = cum[..., -1:]
    probs = jnp.concatenate([p0, pk, pK], axis=-1)
    probs = jnp.maximum(probs, 1e-7)
    probs = probs / jnp.sum(probs, axis=-1, keepdims=True)
    return probs, logits, cum


if __name__ == "__main__":
    # Small shapes consistent with the module's (batch, seq, input_dim) input.
    B, S, D = 2, 8, 32
    H = D            # shared_hidden_dim defaults to input_dim
    n_cats = 5
    km1 = n_cats - 1

    key = jax.random.PRNGKey(0)
    k_x, k_w1, k_w2 = jax.random.split(key, 3)

    features = jax.random.normal(k_x, (B, S, D), dtype=jnp.float32)

    # Deterministic parameter init mirroring _init_weights():
    #   kaiming_normal_ (fan_in, relu gain) for linear weights,
    #   zero bias for the shared layer, linspace bias / thresholds for the head.
    # Weights kept in torch (out_features, in_features) layout.
    w1 = jax.random.normal(k_w1, (H, D), jnp.float32) * jnp.sqrt(2.0 / D)
    b1 = jnp.zeros((H,), jnp.float32)
    w2 = jax.random.normal(k_w2, (km1, H), jnp.float32) * jnp.sqrt(2.0 / H)
    b2 = jnp.linspace(1.0, -1.0, km1, dtype=jnp.float32)
    thresholds = jnp.linspace(-0.5, 0.5, km1, dtype=jnp.float32)

    probs, info = coral_forward(features, w1, b1, w2, b2, thresholds,
                                n_cats=n_cats, lane_tile=2048)
    jax.block_until_ready(probs)

    # Sanity check against the pure-JAX reference.
    ref_probs, ref_logits, ref_cum = _reference_forward(
        features, w1, b1, w2, b2, thresholds, n_cats)
    assert jnp.allclose(probs, ref_probs, atol=1e-5, rtol=1e-5)
    assert jnp.allclose(info["logits"], ref_logits, atol=1e-5, rtol=1e-5)
    assert jnp.allclose(info["cumulative_probs"], ref_cum, atol=1e-5, rtol=1e-5)
    assert jnp.allclose(jnp.sum(probs, axis=-1), 1.0, atol=1e-5)

    print("KERNEL_OK")
</pallas_src>

<mosaic_0001>
module attributes {stable_mosaic.version = 11 : i64} {
  func.func @coral_kernel(%arg0: i32, %arg1: memref<32x128xf32, #tpu.memory_space<vmem>>, %arg2: memref<32x32xf32, #tpu.memory_space<vmem>>, %arg3: memref<32x1xf32, #tpu.memory_space<vmem>>, %arg4: memref<4x32xf32, #tpu.memory_space<vmem>>, %arg5: memref<4x1xf32, #tpu.memory_space<vmem>>, %arg6: memref<5x128xf32, #tpu.memory_space<vmem>>, %arg7: memref<4x128xf32, #tpu.memory_space<vmem>>, %arg8: memref<4x128xf32, #tpu.memory_space<vmem>>) attributes {dimension_semantics = [#tpu.dimension_semantics<parallel>], iteration_bounds = array<i64: 1>, scalar_prefetch = 0 : i64, scratch_operands = 0 : i64, tpu.core_type = #tpu.core_type<tc>, window_params = [{transform_indices = @transform_0, window_bounds = array<i64: 32, 128>}, {pipeline_mode = #tpu.pipeline_mode<synchronous>, transform_indices = @transform_1, window_bounds = array<i64: 32, 32>}, {pipeline_mode = #tpu.pipeline_mode<synchronous>, transform_indices = @transform_2, window_bounds = array<i64: 32, 1>}, {pipeline_mode = #tpu.pipeline_mode<synchronous>, transform_indices = @transform_3, window_bounds = array<i64: 4, 32>}, {pipeline_mode = #tpu.pipeline_mode<synchronous>, transform_indices = @transform_4, window_bounds = array<i64: 4, 1>}, {transform_indices = @transform_5, window_bounds = array<i64: 5, 128>}, {transform_indices = @transform_6, window_bounds = array<i64: 4, 128>}, {transform_indices = @transform_7, window_bounds = array<i64: 4, 128>}]} {
    %c0 = arith.constant 0 : index
    %c0_0 = arith.constant 0 : index
    %0 = vector.load %arg1[%c0, %c0_0] : memref<32x128xf32, #tpu.memory_space<vmem>>, vector<32x128xf32>
    %c0_1 = arith.constant 0 : index
    %c0_2 = arith.constant 0 : index
    %1 = vector.load %arg2[%c0_1, %c0_2] : memref<32x32xf32, #tpu.memory_space<vmem>>, vector<32x32xf32>
    %cst = arith.constant dense<0.000000e+00> : vector<32x128xf32>
    %2 = tpu.matmul %1, %0, %cst {dimension_numbers = #tpu.dot_dimension_numbers<[1], [0], [0], [1], [0, 0, 1, 1], [], []>} : vector<32x32xf32>, vector<32x128xf32>, vector<32x128xf32> -> vector<32x128xf32>
    %c0_3 = arith.constant 0 : index
    %c0_4 = arith.constant 0 : index
    %3 = vector.load %arg3[%c0_3, %c0_4] : memref<32x1xf32, #tpu.memory_space<vmem>>, vector<32x1xf32>
    %4 = vector.broadcast %3 : vector<32x1xf32> to vector<32x128xf32>
    %5 = arith.addf %2, %4 : vector<32x128xf32>
    %cst_5 = arith.constant 0.000000e+00 : f32
    %6 = vector.broadcast %cst_5 : f32 to vector<32x128xf32>
    %7 = arith.maximumf %5, %6 : vector<32x128xf32>
    %c0_6 = arith.constant 0 : index
    %c0_7 = arith.constant 0 : index
    %8 = vector.load %arg4[%c0_6, %c0_7] : memref<4x32xf32, #tpu.memory_space<vmem>>, vector<4x32xf32>
    %cst_8 = arith.constant dense<0.000000e+00> : vector<4x128xf32>
    %9 = tpu.matmul %8, %7, %cst_8 {dimension_numbers = #tpu.dot_dimension_numbers<[1], [0], [0], [1], [0, 0, 1, 1], [], []>} : vector<4x32xf32>, vector<32x128xf32>, vector<4x128xf32> -> vector<4x128xf32>
    %c0_9 = arith.constant 0 : index
    %c0_10 = arith.constant 0 : index
    %10 = vector.load %arg5[%c0_9, %c0_10] : memref<4x1xf32, #tpu.memory_space<vmem>>, vector<4x1xf32>
    %11 = vector.broadcast %10 : vector<4x1xf32> to vector<4x128xf32>
    %12 = arith.addf %9, %11 : vector<4x128xf32>
    %13 = arith.negf %12 : vector<4x128xf32>
    %14 = math.exp %13 : vector<4x128xf32>
    %cst_11 = arith.constant 1.000000e+00 : f32
    %15 = vector.broadcast %cst_11 : f32 to vector<4x128xf32>
    %16 = arith.addf %15, %14 : vector<4x128xf32>
    %17 = arith.divf %15, %16 : vector<4x128xf32>
    %18 = vector.extract_strided_slice %17 {offsets = [0, 0], sizes = [1, 128], strides = [1, 1]} : vector<4x128xf32> to vector<1x128xf32>
    %19 = vector.extract_strided_slice %17 {offsets = [1, 0], sizes = [1, 128], strides = [1, 1]} : vector<4x128xf32> to vector<1x128xf32>
    %20 = arith.minimumf %19, %18 : vector<1x128xf32>
    %21 = vector.extract_strided_slice %17 {offsets = [2, 0], sizes = [1, 128], strides = [1, 1]} : vector<4x128xf32> to vector<1x128xf32>
    %22 = arith.minimumf %21, %20 : vector<1x128xf32>
    %23 = vector.extract_strided_slice %17 {offsets = [3, 0], sizes = [1, 128], strides = [1, 1]} : vector<4x128xf32> to vector<1x128xf32>
    %24 = arith.minimumf %23, %22 : vector<1x128xf32>
    %25 = tpu.concatenate %18, %20, %22, %24 in 0 : vector<1x128xf32>, vector<1x128xf32>, vector<1x128xf32>, vector<1x128xf32> -> vector<4x128xf32>
    %26 = vector.extract_strided_slice %25 {offsets = [0, 0], sizes = [1, 128], strides = [1, 1]} : vector<4x128xf32> to vector<1x128xf32>
    %cst_12 = arith.constant 1.000000e+00 : f32
    %27 = vector.broadcast %cst_12 : f32 to vector<1x128xf32>
    %28 = arith.subf %27, %26 : vector<1x128xf32>
    %29 = vector.extract_strided_slice %25 {offsets = [0, 0], sizes = [3, 128], strides = [1, 1]} : vector<4x128xf32> to vector<3x128xf32>
    %30 = vector.extract_strided_slice %25 {offsets = [1, 0], sizes = [3, 128], strides = [1, 1]} : vector<4x128xf32> to vector<3x128xf32>
    %31 = arith.subf %29, %30 : vector<3x128xf32>
    %32 = vector.extract_strided_slice %25 {offsets = [3, 0], sizes = [1, 128], strides = [1, 1]} : vector<4x128xf32> to vector<1x128xf32>
    %33 = tpu.concatenate %28, %31, %32 in 0 : vector<1x128xf32>, vector<3x128xf32>, vector<1x128xf32> -> vector<5x128xf32>
    %cst_13 = arith.constant 1.000000e-07 : f32
    %34 = vector.broadcast %cst_13 : f32 to vector<5x128xf32>
    %35 = arith.maximumf %33, %34 : vector<5x128xf32>
    %cst_14 = arith.constant dense<0.000000e+00> : vector<128xf32>
    %36 = vector.multi_reduction <add>, %35, %cst_14 [0] : vector<5x128xf32> to vector<128xf32>
    %37 = vector.shape_cast %36 : vector<128xf32> to vector<1x128xf32>
    %38 = tpu.reciprocal %37 {approx = true} : vector<1x128xf32> -> vector<1x128xf32>
    %39 = arith.mulf %37, %38 : vector<1x128xf32>
    %cst_15 = arith.constant 2.000000e+00 : f32
    %40 = vector.broadcast %cst_15 : f32 to vector<1x128xf32>
    %41 = arith.subf %40, %39 : vector<1x128xf32>
    %42 = arith.mulf %38, %41 : vector<1x128xf32>
    %43 = vector.broadcast %42 : vector<1x128xf32> to vector<5x128xf32>
    %44 = arith.mulf %35, %43 : vector<5x128xf32>
    %c0_16 = arith.constant 0 : index
    %c0_17 = arith.constant 0 : index
    %45 = vector.load %arg6[%c0_16, %c0_17] : memref<5x128xf32, #tpu.memory_space<vmem>>, vector<5x128xf32>
    tpu.vector_store %arg6[%c0_16, %c0_17], %44 {strides = array<i32>} : memref<5x128xf32, #tpu.memory_space<vmem>>, vector<5x128xf32>,
    %c0_18 = arith.constant 0 : index
    %c0_19 = arith.constant 0 : index
    %46 = vector.load %arg7[%c0_18, %c0_19] : memref<4x128xf32, #tpu.memory_space<vmem>>, vector<4x128xf32>
    tpu.vector_store %arg7[%c0_18, %c0_19], %12 {strides = array<i32>} : memref<4x128xf32, #tpu.memory_space<vmem>>, vector<4x128xf32>,
    %c0_20 = arith.constant 0 : index
    %c0_21 = arith.constant 0 : index
    %47 = vector.load %arg8[%c0_20, %c0_21] : memref<4x128xf32, #tpu.memory_space<vmem>>, vector<4x128xf32>
    tpu.vector_store %arg8[%c0_20, %c0_21], %25 {strides = array<i32>} : memref<4x128xf32, #tpu.memory_space<vmem>>, vector<4x128xf32>,
    return
  }
  func.func @transform_0(%arg0: i32) -> (i32, i32) {
    %c0_i32 = arith.constant 0 : i32
    %c0_i32_0 = arith.constant 0 : i32
    return %c0_i32, %arg0 : i32, i32
  }
  func.func @transform_1(%arg0: i32) -> (i32, i32) {
    %c0_i32 = arith.constant 0 : i32
    %c0_i32_0 = arith.constant 0 : i32
    %c0_i32_1 = arith.constant 0 : i32
    return %c0_i32, %c0_i32_0 : i32, i32
  }
  func.func @transform_2(%arg0: i32) -> (i32, i32) {
    %c0_i32 = arith.constant 0 : i32
    %c0_i32_0 = arith.constant 0 : i32
    %c0_i32_1 = arith.constant 0 : i32
    return %c0_i32, %c0_i32_0 : i32, i32
  }
  func.func @transform_3(%arg0: i32) -> (i32, i32) {
    %c0_i32 = arith.constant 0 : i32
    %c0_i32_0 = arith.constant 0 : i32
    %c0_i32_1 = arith.constant 0 : i32
    return %c0_i32, %c0_i32_0 : i32, i32
  }
  func.func @transform_4(%arg0: i32) -> (i32, i32) {
    %c0_i32 = arith.constant 0 : i32
    %c0_i32_0 = arith.constant 0 : i32
    %c0_i32_1 = arith.constant 0 : i32
    return %c0_i32, %c0_i32_0 : i32, i32
  }
  func.func @transform_5(%arg0: i32) -> (i32, i32) {
    %c0_i32 = arith.constant 0 : i32
    %c0_i32_0 = arith.constant 0 : i32
    return %c0_i32, %arg0 : i32, i32
  }
  func.func @transform_6(%arg0: i32) -> (i32, i32) {
    %c0_i32 = arith.constant 0 : i32
    %c0_i32_0 = arith.constant 0 : i32
    return %c0_i32, %arg0 : i32, i32
  }
  func.func @transform_7(%arg0: i32) -> (i32, i32) {
    %c0_i32 = arith.constant 0 : i32
    %c0_i32_0 = arith.constant 0 : i32
    return %c0_i32, %arg0 : i32, i32
  }
}

</mosaic_0001>

<bundles_post_ra>
// kernel: tpu_custom_call.1
= control target key start
LH: loop header
LB: loop body
LE: loop exit
PB: predicated region body
PF: predicated region fallthrough
CT: control target
= control target key end

     0   :  { %13 = vsyncpa [#allocation3], 0  ;;  %s594_s0 = inlined_call_operand.vmem [shape: f32[32,128], index: 0, kind: input, shape index: {}]   ;;  %s595_s1 = inlined_call_operand.hbm [shape: f32[32,32], index: 1, kind: input, shape index: {}]   ;;  %s596_s2 = inlined_call_operand.vmem [shape: f32[32,1], index: 2, kind: input, shape index: {}]   ;;  %s597_s3 = inlined_call_operand.vmem [shape: f32[4,32], index: 3, kind: input, shape index: {}]   ;;  %s598_s4 = inlined_call_operand.vmem [shape: f32[4,1], index: 4, kind: input, shape index: {}]   ;;  %s599_s5 = inlined_call_operand.hbm [shape: f32[5,128], index: 5, kind: output, shape index: {0}]   ;;  %s600_s6 = inlined_call_operand.hbm [shape: f32[4,128], index: 6, kind: output, shape index: {1}]   ;;  %s601_s7 = inlined_call_operand.hbm [shape: f32[4,128], index: 7, kind: output, shape index: {2}]  }
   0x1   :  { %14 = vsyncpa [#allocation4], 0 }
   0x2   :  { %15 = vsyncpa [#allocation7], 0  ;;  %s496_s24 = smov [#allocation2]  }
   0x3   :  { %s23_s25 = sshll.u32 %s496_s24, 4  ;;  %s24_s25 = int_to_ptr.vmem [resolvable:$true] %s23_s25 }
   0x4   :  { %s418_s26 = scalar_lea.vmem %s24_s25, 512  ;;  %p423_p1 = scmp.lt.s32.totalorder %s24_s25, %s24_s25 }
   0x5   :  { %p419_p0 = scmp.ne.s32.totalorder %s24_s25, %s418_s26  ;;  %p424_p2 = scmp.lt.s32.totalorder %s418_s26, %s418_s26 }
   0x7   :  { %p425_p3 = por %p424_p2, %p423_p1 }
   0x9   :  { %p426_p4 = pnand %p425_p3, %p419_p0 }
   0xb   :  { %429 = shalt.err (!%p426_p4)
}
   0xc   :  { %s497_s27 = smov 128   ;;  %s498_s28 = smov 8  }
   0xd   :  { %29 = dma.hbm_to_vmem [thread:$0]  %s595_s1, 512, %s24_s25, [#allocation3], %s497_s27, %s497_s27, %s498_s28  }
   0xe   :  { %490 = dma.done.wait [#allocation3], 512  }
   0xf   :  { %491 = vsyncadd [#allocation3], 4294966784  ;;  %v499_v0 = vmov 0   ;;  %vm71_vm0 = vcmask 261120   ;;  %v42_v1 = vld [vmem:[%s594_s0 + $0x18] sm:$0xff]  ;;  %v41_v2 = vld [vmem:[%s594_s0 + $0x10] sm:$0xff] }
  0x10   :  { %402 = vset.pattern.permute.xlu0 %v499_v0  ;;  %403 = vset.pattern.permute.xlu1 %v499_v0  ;;  %v43_v3 = vld [vmem:[#allocation2] sm:$0xff]  ;;  %v40_v4 = vld [vmem:[%s594_s0 + $0x8] sm:$0xff]  ;;  %v50_v5 = vld [vmem:[%s596_s2 + $0x18] sm:$0xff]  ;;  %v500_v14 = vmov 0.0   ;;  %vm501_vm1 = vmmov 0  }
  0x11   :  { %368 = vmatprep.subr.mxu0 %v42_v1  ;;  %376 = vmatprep.mubr.msk.f32.mxu0 %vm71_vm0, %v43_v3  ;;  %v48_v6 = vld [vmem:[%s596_s2 + $0x8] sm:$0xff]  ;;  %v39_v7 = vld [vmem:[%s594_s0] sm:$0xff]  ;;  %v49_v8 = vld [vmem:[%s596_s2 + $0x10] sm:$0xff] }
  0x12   :  { %369 = vmatpush3.msra.mxu0 %v42_v1  ;;  %68 = vperm.xlu0 %402, %v50_v5   ;;  %v47_v9 = vld [vmem:[%s596_s2] sm:$0xff]  ;;  %v44_v10 = vld [vmem:[#allocation2 + $0x8] sm:$0xff]  ;;  %v45_v11 = vld [vmem:[#allocation2 + $0x10] sm:$0xff] }
  0x13   :  { %370 = vmatprep.subr.mxu0 %v41_v2  ;;  %58 = vperm.xlu1 %403, %v48_v6   ;;  %v174_v12 = vld [vmem:[%s598_s4] sm:$0xf]  ;;  %v46_v13 = vld [vmem:[#allocation2 + $0x18] sm:$0xff]  ;;  %s502_s4 = smov [#allocation6]  }
  0x14   :  { %371 = vmatpush3.msra.mxu0 %v41_v2  ;;  %382 = vmatprep.subr.mxu1 %v500_v14  ;;  %v173_v31 = vld [vmem:[%s597_s3] sm:$0xf]  ;;  %s323_s25 = sshll.u32 %s502_s4, 4  ;;  %s324_s25 = int_to_ptr.vmem [resolvable:$true] %s323_s25 }
  0x15   :  { %372 = vmatprep.subr.mxu0 %v40_v4  ;;  %390 = vmatprep.mubr.msk.f32.mxu1 %vm501_vm1, %v500_v14  ;;  %s430_s26 = scalar_lea.vmem %s324_s25, 64  ;;  %p435_p6 = scmp.lt.s32.totalorder %s324_s25, %s324_s25 }
  0x16   :  { %373 = vmatpush3.msra.mxu0 %v40_v4  ;;  %63 = vperm.xlu0 %402, %v49_v8   ;;  %p431_p5 = scmp.ne.s32.totalorder %s324_s25, %s430_s26  ;;  %p436_p7 = scmp.lt.s32.totalorder %s430_s26, %s430_s26 }
  0x17   :  { %374 = vmatprep.subr.mxu0 %v39_v7  ;;  %53 = vperm.xlu1 %403, %v47_v9  }
  0x18   :  { %375 = vmatpush3.msra.mxu0 %v39_v7  ;;  %p437_p8 = por %p436_p7, %p435_p6 }
  0x19   :  { %377 = vmatmul.mubr.msk.f32.vlgmr.msra.gmra.mxu0 %vm71_vm0, %v44_v10 }
  0x1a   :  { %379 = vmatprep.mubr.msk.f32.mxu0 %vm71_vm0, %v45_v11  ;;  %177 = vperm.xlu0 %402, %v174_v12   ;;  %p438_p9 = pnand %p437_p8, %p431_p5 }
  0x1d   :  { %380 = vmatmul.mubr.msk.f32.gmra.mxu0 %vm71_vm0, %v46_v13 }
  0x8d   :  { %v69_v15 = vpop.permute.xlu0 %68 }
  0x8e   :  { %v59_v16 = vpop.permute.xlu1 %58 }
  0x91   :  { %v64_v20 = vpop.permute.xlu0 %63 }
  0x92   :  { %v54_v22 = vpop.permute.xlu1 %53 }
  0x95   :  { %v178_v32 = vpop.permute.xlu0 %177 }
  0xd9   :  { %v378_v17 = vpop.f32.mrf.mxu0 }
  0xda   :  { %v156_v24 = vadd.f32 %v378_v17, %v59_v16 }
  0xdb   :  { %v150_v18 = vpop.f32.mrf.mxu0 }
  0xdc   :  { %v151_v27 = vadd.f32 %v150_v18, %v54_v22  ;;  %v170_v29 = vmax.f32 %v156_v24, 0.0 }
  0xdd   :  { %v381_v19 = vpop.f32.mrf.mxu0 }
  0xde   :  { %v166_v21 = vadd.f32 %v381_v19, %v69_v15  ;;  %v169_v30 = vmax.f32 %v151_v27, 0.0 }
  0xdf   :  { %v160_v23 = vpop.f32.mrf.mxu0 }
  0xe0   :  { %v172_v25 = vmax.f32 %v166_v21, 0.0  ;;  %v161_v26 = vadd.f32 %v160_v23, %v64_v20 }
  0xe2   :  { %v171_v28 = vmax.f32 %v161_v26, 0.0  ;;  %383 = vmatpush3.msra.mxu1 %v172_v25 }
  0xe3   :  { %384 = vmatprep.subr.mxu1 %v500_v14 }
  0xe4   :  { %385 = vmatpush3.msra.mxu1 %v171_v28 }
  0xe5   :  { %386 = vmatprep.subr.mxu1 %v500_v14 }
  0xe6   :  { %387 = vmatpush3.msra.mxu1 %v170_v29 }
  0xe7   :  { %388 = vmatprep.subr.mxu1 %v500_v14 }
  0xe8   :  { %389 = vmatpush3.msra.mxu1 %v169_v30 }
  0xe9   :  { %391 = vmatmul.mubr.msk.f32.vlgmr.msra.gmra.mxu1 %vm71_vm0, %v173_v31 }
 0x1a9   :  { %v249_v33 = vpop.f32.mrf.mxu1 }
 0x1aa   :  { %v250_v34 = vadd.f32 %v249_v33, %v178_v32 }
 0x1ab   :  { %v392_v35 = vpop.f32.mrf.mxu1 }
 0x1ac   :  { %v354_v36 = vmul.f32 -1.442695, %v250_v34  ;;  %305 = vst [vmem:[#allocation6] sm:$0xf] %v250_v34 }
 0x1ad   :  { %441 = shalt.err (!%p438_p9)
}
 0x1ae   :  { %326 = dma.vmem_to_hbm [thread:$0]  %s324_s25, 64, %s600_s6, [#allocation7]   ;;  %404 = vpow2.f32 %v354_v36  ;;  %vm271_vm2 = vcmask 1040384   ;;  %vm273_vm3 = vcmask 1041408   ;;  %vm275_vm4 = vcmask 1042432  }
 0x1af   :  { %s503_s28 = smov [#allocation8]  }
 0x1b0   :  { %s333_s29 = sshll.u32 %s503_s28, 4  ;;  %s334_s29 = int_to_ptr.vmem [resolvable:$true] %s333_s29 }
 0x1b1   :  { %s450_s6 = scalar_lea.vmem %s334_s29, 64  ;;  %p455_p11 = scmp.lt.s32.totalorder %s334_s29, %s334_s29 }
 0x1b2   :  { %p451_p10 = scmp.ne.s32.totalorder %s334_s29, %s450_s6  ;;  %p456_p12 = scmp.lt.s32.totalorder %s450_s6, %s450_s6 }
 0x1b4   :  { %p457_p13 = por %p456_p12, %p455_p11 }
 0x1b6   :  { %p458_p0 = pnand %p457_p13, %p451_p10 }
 0x1bb   :  { %v405_v37 = vpop.eup %404 }
 0x1bc   :  { %v256_v38 = vadd.f32 1.0, %v405_v37 }
 0x1be   :  { %406 = vrcp.f32 %v256_v38 }
 0x1cb   :  { %v407_v39 = vpop.eup %406 }
 0x1cc   :  { %v260_v40 = vrot.slane %v407_v39, 7 }
 0x1ce   :  { %v262_v41 = vmin.f32 %v407_v39, %v260_v40 }
 0x1d0   :  { %v264_v42 = vrot.slane %v262_v41, 7  ;;  %v272_v46 = vsel %vm271_vm2, %v407_v39, %v262_v41 }
 0x1d2   :  { %v266_v43 = vmin.f32 %v407_v39, %v264_v42 }
 0x1d4   :  { %v268_v44 = vrot.slane %v266_v43, 7  ;;  %v274_v47 = vsel %vm273_vm3, %v272_v46, %v266_v43 }
 0x1d6   :  { %v270_v45 = vmin.f32 %v407_v39, %v268_v44 }
 0x1d8   :  { %v276_v48 = vsel %vm275_vm4, %v274_v47, %v270_v45 }
 0x1d9   :  { %v279_v49 = vrot.slane %v276_v48, 1  ;;  %306 = vst [vmem:[#allocation8] sm:$0xf] %v276_v48 }
 0x1da   :  { %461 = shalt.err (!%p458_p0)
}
 0x1db   :  { %336 = dma.vmem_to_hbm [thread:$0]  %s334_s29, 64, %s601_s7, [#allocation7]   ;;  %v281_v50 = vsub.f32 %v276_v48, %v279_v49  ;;  %v277_v51 = vsub.f32 1.0, %v276_v48  ;;  %vm288_vm5 = vcmask 1043456   ;;  %v285_v53 = vrot.slane %v276_v48, 7 }
 0x1dc   :  { %vm291_vm6 = vcmask 1044480   ;;  %s504_s7 = smov [#allocation5]  }
 0x1dd   :  { %v283_v52 = vrot.slane %v281_v50, 7  ;;  %s313_s9 = sshll.u32 %s504_s7, 4  ;;  %s314_s9 = int_to_ptr.vmem [resolvable:$true] %s313_s9 }
 0x1de   :  { %s470_s10 = scalar_lea.vmem %s314_s9, 128  ;;  %p475_p2 = scmp.lt.s32.totalorder %s314_s9, %s314_s9 }
 0x1df   :  { %v287_v54 = vsel %vm271_vm2, %v277_v51, %v283_v52  ;;  %p471_p1 = scmp.ne.s32.totalorder %s314_s9, %s470_s10  ;;  %p476_p3 = scmp.lt.s32.totalorder %s470_s10, %s470_s10 }
 0x1e0   :  { %v289_v55 = vsel %vm288_vm5, %v287_v54, %v285_v53 }
 0x1e1   :  { %v290_v56 = vmax.f32 %v289_v55, 1e-07  ;;  %p477_p4 = por %p476_p3, %p475_p2 }
 0x1e3   :  { %v292_v57 = vsel %vm291_vm6, %v290_v56, 0.0  ;;  %p478_p5 = pnand %p477_p4, %p471_p1 }
 0x1e4   :  { %v293_v58 = vrot.slane %v292_v57, 4 }
 0x1e6   :  { %v294_v59 = vadd.f32 %v293_v58, %v292_v57 }
 0x1e8   :  { %v295_v60 = vrot.slane %v294_v59, 2 }
 0x1ea   :  { %v296_v61 = vadd.f32 %v295_v60, %v294_v59 }
 0x1ec   :  { %v297_v62 = vrot.slane %v296_v61, 1 }
 0x1ee   :  { %v298_v63 = vadd.f32 %v297_v62, %v296_v61 }
 0x1f0   :  { %408 = vrcp.f32 %v298_v63 }
 0x1fd   :  { %v409_v0 = vpop.eup %408 }
 0x1fe   :  { %v300_v1 = vmul.f32 %v409_v0, %v298_v63 }
 0x200   :  { %v301_v2 = vsub.f32 2.0, %v300_v1 }
 0x202   :  { %v302_v3 = vmul.f32 %v409_v0, %v301_v2 }
 0x204   :  { %v303_v4 = vmul.f32 %v302_v3, %v290_v56 }
 0x206   :  { %304 = vst [vmem:[#allocation5] sm:$0x1f] %v303_v4 }
 0x207   :  { %481 = shalt.err (!%p478_p5)
}
 0x208   :  { %316 = dma.vmem_to_hbm [thread:$0]  %s314_s9, 128, %s599_s5, [#allocation4]  }
 0x209   :  { %492 = dma.done.wait [#allocation4], 128  }
 0x20a   :  { %493 = vsyncadd [#allocation4], 4294967168 }
 0x20b   :  { %494 = dma.done.wait [#allocation7], 128  }
 0x20c   :  { %495 = vsyncadd [#allocation7], 4294967168 }
 0x20d   :  { %346 = vsyncpa [#allocation3], 1 }
 0x20e   :  { %347 = vsyncpa [#allocation4], 1 }
 0x20f   :  { %348 = vsyncpa [#allocation7], 1 }

</bundles_post_ra>
